<compile_context>
chip_gen: v7x
topology: tpu7x:2x2x1
jax: 0.10.0
libtpu: 0.0.40
codegen_flags: <defaults>
</compile_context>

<pallas_src>
import jax
import jax.numpy as jnp
import numpy as np
from jax.experimental import pallas as pl
from jax.experimental.pallas import tpu as pltpu  # noqa: F401  (TPU backend)

LANE = 128  # TPU lane width; the score output is padded to a multiple of this.


# ----------------------------------------------------------------------------
# Single fused kernel: both RGCN layers + edge predictor.
# All operands are full-array VMEM blocks (no grid); intermediates stay in
# vregs/VMEM and never touch HBM.
# ----------------------------------------------------------------------------
def _fused_model_kernel(aw_ref, x_ref, w1_ref, b1_ref, w2_ref, b2_ref,
                        src_ref, dst_ref, wpc_ref, bp_ref, o_ref):
    R = w1_ref.shape[0]
    N = x_ref.shape[0]
    E, C_pad = o_ref.shape

    a_wide = aw_ref[...]                                   # (N, R*N) static graph
    x = x_ref[...]

    # ---- RGCN layer 1:  h1 = relu( A_wide @ vstack_r(x @ W1_r) + b1_sum ) ----
    # R small dots (tiny K) + one wide dot with K = R*N.
    y1 = jnp.concatenate(
        [jnp.dot(x, w1_ref[r], preferred_element_type=jnp.float32)
         for r in range(R)], axis=0)                        # (R*N, HID), sublane concat
    h1 = jnp.maximum(
        jnp.dot(a_wide, y1, preferred_element_type=jnp.float32) + b1_ref[...],
        0.0)

    # ---- RGCN layer 2 (no activation) ----
    y2 = jnp.concatenate(
        [jnp.dot(h1, w2_ref[r], preferred_element_type=jnp.float32)
         for r in range(R)], axis=0)                        # (R*N, OUT)
    h2 = jnp.dot(a_wide, y2, preferred_element_type=jnp.float32) + b2_ref[...]

    # ---- Edge predictor (2 dots, lane-dense intermediates) ----
    # Zflat = h2 @ [Wp_top | Wp_bot]  -> split at the lane-aligned C_pad boundary.
    zflat = jnp.dot(h2, wpc_ref[...], preferred_element_type=jnp.float32)  # (N, 2*C_pad)
    z = jnp.concatenate([zflat[:, :C_pad], zflat[:, C_pad:]], axis=0)      # (2N, C_pad)

    # One-hot selection (E, 2N) built in-kernel from int32 edge endpoints:
    # lanes [0, N) pick the src row, lanes [N, 2N) pick the dst row.
    iota2 = jax.lax.broadcasted_iota(jnp.int32, (E, 2 * N), 1)
    s_mat = jnp.logical_or(iota2 == src_ref[...],
                           iota2 == dst_ref[...] + N).astype(jnp.float32)

    scores = jnp.dot(s_mat, z, preferred_element_type=jnp.float32) + bp_ref[...]
    o_ref[...] = scores.astype(o_ref.dtype)                 # full-width lane-dense store


# ----------------------------------------------------------------------------
# Static (per-model / per-graph) preprocessing, run ONCE at init time:
#  * A_wide layout of the normalized relation adjacencies,
#  * predictor weight transpose / concat-split / lane padding,
#  * bias lane padding.
# ----------------------------------------------------------------------------
def prepare_static(params, ahat):
    R, N, _ = ahat.shape
    O = params["W2"].shape[-1]
    C = params["Wp"].shape[0]
    C_pad = ((C + LANE - 1) // LANE) * LANE
    pad = C_pad - C

    a_wide = jnp.transpose(ahat, (1, 0, 2)).reshape(N, R * N)   # (N, R*N)

    wp_t = params["Wp"].T                                       # (2*O, C)
    wp_top = jnp.pad(wp_t[:O], ((0, 0), (0, pad)))              # (O, C_pad)
    wp_bot = jnp.pad(wp_t[O:], ((0, 0), (0, pad)))              # (O, C_pad)
    wp_cat = jnp.concatenate([wp_top, wp_bot], axis=1)          # (O, 2*C_pad)
    bp_pad = jnp.pad(params["bp"].reshape(1, C), ((0, 0), (0, pad)))  # (1, C_pad)

    prepped = dict(params)
    prepped["wp_cat"] = wp_cat
    prepped["bp_pad"] = bp_pad
    return prepped, a_wide


# ----------------------------------------------------------------------------
# Per-call wrapper: only edge-index-dependent preprocessing + one pallas_call.
# ----------------------------------------------------------------------------
def model_forward(prepped, a_wide, x, dec_src, dec_dst):
    E = dec_src.shape[0]
    C = prepped["Wp"].shape[0]                 # n_classes
    C_pad = prepped["wp_cat"].shape[1] // 2

    src = dec_src.astype(jnp.int32).reshape(E, 1)
    dst = dec_dst.astype(jnp.int32).reshape(E, 1)

    scores_pad = pl.pallas_call(
        _fused_model_kernel,
        out_shape=jax.ShapeDtypeStruct((E, C_pad), jnp.float32),
    )(a_wide, x,
      prepped["W1"], prepped["b1_sum"],
      prepped["W2"], prepped["b2_sum"],
      src, dst, prepped["wp_cat"], prepped["bp_pad"])

    return scores_pad[:, :C]


# ----------------------------------------------------------------------------
# Helpers: DGL-style symmetric normalization of a dense relation adjacency,
# and a plain-JAX reference for correctness checking.
# ----------------------------------------------------------------------------
def normalize_adj(a):
    # a: (N_dst, N_src), a[d, s] = edge count s -> d
    in_deg = a.sum(axis=1)   # per dst
    out_deg = a.sum(axis=0)  # per src
    norm_in = jnp.where(in_deg > 0, in_deg ** -0.5, 0.0)
    norm_out = jnp.where(out_deg > 0, out_deg ** -0.5, 0.0)
    return norm_in[:, None] * a * norm_out[None, :]


def reference_forward(params, ahat, x, dec_src, dec_dst):
    h = jnp.einsum("rds,sf,rfh->dh", ahat, x, params["W1"]) + params["b1_sum"]
    h = jnp.maximum(h, 0.0)
    h = jnp.einsum("rds,sf,rfh->dh", ahat, h, params["W2"]) + params["b2_sum"]
    xc = jnp.concatenate([h[dec_src], h[dec_dst]], axis=1)
    return xc @ params["Wp"].T + params["bp"]


if __name__ == "__main__":
    key = jax.random.PRNGKey(0)

    # Small synthetic heterograph: one node type, R relation types.
    N = 16            # nodes
    R = 3             # len(rel_names)  (= n_classes of the predictor)
    IN_F = 8          # in_features
    HID_F = 16        # hidden_features
    OUT_F = 8         # out_features
    E_DEC = 24        # edges in dec_graph

    ks = jax.random.split(key, 10)

    # Random per-relation adjacency (R, N, N), then DGL 'both' normalization.
    a_raw = jax.random.bernoulli(ks[0], p=0.3, shape=(R, N, N)).astype(jnp.float32)
    ahat = jax.vmap(normalize_adj)(a_raw)

    # Node features.
    x = jax.random.normal(ks[1], (N, IN_F), dtype=jnp.float32)

    # Parameters (deterministic init).  Bias of HeteroGraphConv(sum) folds to
    # the sum of per-relation GraphConv biases (all relations present in g).
    scale = 0.1
    params = {
        "W1": scale * jax.random.normal(ks[2], (R, IN_F, HID_F), dtype=jnp.float32),
        "b1_sum": (scale * jax.random.normal(ks[3], (R, HID_F), dtype=jnp.float32)
                   ).sum(axis=0, keepdims=True),
        "W2": scale * jax.random.normal(ks[4], (R, HID_F, OUT_F), dtype=jnp.float32),
        "b2_sum": (scale * jax.random.normal(ks[5], (R, OUT_F), dtype=jnp.float32)
                   ).sum(axis=0, keepdims=True),
        # predictor: nn.Linear(2*out_features, n_classes), PyTorch layout (C, 2*O)
        "Wp": scale * jax.random.normal(ks[6], (R, 2 * OUT_F), dtype=jnp.float32),
        "bp": scale * jax.random.normal(ks[7], (R,), dtype=jnp.float32),
    }

    # dec_graph edges (src/dst node ids).
    dec_src = jax.random.randint(ks[8], (E_DEC,), 0, N)
    dec_dst = jax.random.randint(ks[9], (E_DEC,), 0, N)

    # One-time static preprocessing (graph structure + predictor weight layout).
    prepped, a_wide = prepare_static(params, ahat)
    prepped = jax.tree_util.tree_map(jax.block_until_ready, prepped)
    a_wide = jax.block_until_ready(a_wide)

    fwd = jax.jit(model_forward)
    scores = fwd(prepped, a_wide, x, dec_src, dec_dst)
    scores = jax.block_until_ready(scores)

    ref = reference_forward(params, ahat, x, dec_src, dec_dst)
    np.testing.assert_allclose(np.asarray(scores), np.asarray(ref),
                               rtol=1e-4, atol=1e-4)

    assert scores.shape == (E_DEC, R)
    print("KERNEL_OK")
</pallas_src>

<mosaic_0001>
module attributes {stable_mosaic.version = 11 : i64} {
  func.func @_fused_model_kernel(%arg0: memref<16x48xf32, #tpu.memory_space<vmem>>, %arg1: memref<16x8xf32, #tpu.memory_space<vmem>>, %arg2: memref<3x8x16xf32, #tpu.memory_space<vmem>>, %arg3: memref<1x16xf32, #tpu.memory_space<vmem>>, %arg4: memref<3x16x8xf32, #tpu.memory_space<vmem>>, %arg5: memref<1x8xf32, #tpu.memory_space<vmem>>, %arg6: memref<24x1xi32, #tpu.memory_space<vmem>>, %arg7: memref<24x1xi32, #tpu.memory_space<vmem>>, %arg8: memref<8x256xf32, #tpu.memory_space<vmem>>, %arg9: memref<1x128xf32, #tpu.memory_space<vmem>>, %arg10: memref<24x128xf32, #tpu.memory_space<vmem>>) attributes {dimension_semantics = [], scalar_prefetch = 0 : i64, scratch_operands = 0 : i64, tpu.core_type = #tpu.core_type<tc>} {
    %c0 = arith.constant 0 : index
    %c0_0 = arith.constant 0 : index
    %0 = vector.load %arg0[%c0, %c0_0] : memref<16x48xf32, #tpu.memory_space<vmem>>, vector<16x48xf32>
    %c0_1 = arith.constant 0 : index
    %c0_2 = arith.constant 0 : index
    %1 = vector.load %arg1[%c0_1, %c0_2] : memref<16x8xf32, #tpu.memory_space<vmem>>, vector<16x8xf32>
    %c0_3 = arith.constant 0 : index
    %c0_4 = arith.constant 0 : index
    %c0_5 = arith.constant 0 : index
    %2 = vector.load %arg2[%c0_3, %c0_4, %c0_5] : memref<3x8x16xf32, #tpu.memory_space<vmem>>, vector<1x8x16xf32>
    %3 = vector.shape_cast %2 : vector<1x8x16xf32> to vector<8x16xf32>
    %cst = arith.constant dense<0.000000e+00> : vector<16x16xf32>
    %4 = tpu.matmul %1, %3, %cst {dimension_numbers = #tpu.dot_dimension_numbers<[1], [0], [0], [1], [0, 0, 1, 1], [], []>} : vector<16x8xf32>, vector<8x16xf32>, vector<16x16xf32> -> vector<16x16xf32>
    %c1 = arith.constant 1 : index
    %c0_6 = arith.constant 0 : index
    %c0_7 = arith.constant 0 : index
    %5 = vector.load %arg2[%c1, %c0_6, %c0_7] : memref<3x8x16xf32, #tpu.memory_space<vmem>>, vector<1x8x16xf32>
    %6 = vector.shape_cast %5 : vector<1x8x16xf32> to vector<8x16xf32>
    %cst_8 = arith.constant dense<0.000000e+00> : vector<16x16xf32>
    %7 = tpu.matmul %1, %6, %cst_8 {dimension_numbers = #tpu.dot_dimension_numbers<[1], [0], [0], [1], [0, 0, 1, 1], [], []>} : vector<16x8xf32>, vector<8x16xf32>, vector<16x16xf32> -> vector<16x16xf32>
    %c2 = arith.constant 2 : index
    %c0_9 = arith.constant 0 : index
    %c0_10 = arith.constant 0 : index
    %8 = vector.load %arg2[%c2, %c0_9, %c0_10] : memref<3x8x16xf32, #tpu.memory_space<vmem>>, vector<1x8x16xf32>
    %9 = vector.shape_cast %8 : vector<1x8x16xf32> to vector<8x16xf32>
    %cst_11 = arith.constant dense<0.000000e+00> : vector<16x16xf32>
    %10 = tpu.matmul %1, %9, %cst_11 {dimension_numbers = #tpu.dot_dimension_numbers<[1], [0], [0], [1], [0, 0, 1, 1], [], []>} : vector<16x8xf32>, vector<8x16xf32>, vector<16x16xf32> -> vector<16x16xf32>
    %11 = tpu.concatenate %4, %7, %10 in 0 : vector<16x16xf32>, vector<16x16xf32>, vector<16x16xf32> -> vector<48x16xf32>
    %cst_12 = arith.constant dense<0.000000e+00> : vector<16x16xf32>
    %12 = tpu.matmul %0, %11, %cst_12 {dimension_numbers = #tpu.dot_dimension_numbers<[1], [0], [0], [1], [0, 0, 1, 1], [], []>} : vector<16x48xf32>, vector<48x16xf32>, vector<16x16xf32> -> vector<16x16xf32>
    %c0_13 = arith.constant 0 : index
    %c0_14 = arith.constant 0 : index
    %13 = vector.load %arg3[%c0_13, %c0_14] : memref<1x16xf32, #tpu.memory_space<vmem>>, vector<1x16xf32>
    %14 = vector.broadcast %13 : vector<1x16xf32> to vector<16x16xf32>
    %15 = arith.addf %12, %14 : vector<16x16xf32>
    %cst_15 = arith.constant 0.000000e+00 : f32
    %16 = vector.broadcast %cst_15 : f32 to vector<16x16xf32>
    %17 = arith.maximumf %15, %16 : vector<16x16xf32>
    %c0_16 = arith.constant 0 : index
    %c0_17 = arith.constant 0 : index
    %c0_18 = arith.constant 0 : index
    %18 = vector.load %arg4[%c0_16, %c0_17, %c0_18] : memref<3x16x8xf32, #tpu.memory_space<vmem>>, vector<1x16x8xf32>
    %19 = vector.shape_cast %18 : vector<1x16x8xf32> to vector<16x8xf32>
    %cst_19 = arith.constant dense<0.000000e+00> : vector<16x8xf32>
    %20 = tpu.matmul %17, %19, %cst_19 {dimension_numbers = #tpu.dot_dimension_numbers<[1], [0], [0], [1], [0, 0, 1, 1], [], []>} : vector<16x16xf32>, vector<16x8xf32>, vector<16x8xf32> -> vector<16x8xf32>
    %c1_20 = arith.constant 1 : index
    %c0_21 = arith.constant 0 : index
    %c0_22 = arith.constant 0 : index
    %21 = vector.load %arg4[%c1_20, %c0_21, %c0_22] : memref<3x16x8xf32, #tpu.memory_space<vmem>>, vector<1x16x8xf32>
    %22 = vector.shape_cast %21 : vector<1x16x8xf32> to vector<16x8xf32>
    %cst_23 = arith.constant dense<0.000000e+00> : vector<16x8xf32>
    %23 = tpu.matmul %17, %22, %cst_23 {dimension_numbers = #tpu.dot_dimension_numbers<[1], [0], [0], [1], [0, 0, 1, 1], [], []>} : vector<16x16xf32>, vector<16x8xf32>, vector<16x8xf32> -> vector<16x8xf32>
    %c2_24 = arith.constant 2 : index
    %c0_25 = arith.constant 0 : index
    %c0_26 = arith.constant 0 : index
    %24 = vector.load %arg4[%c2_24, %c0_25, %c0_26] : memref<3x16x8xf32, #tpu.memory_space<vmem>>, vector<1x16x8xf32>
    %25 = vector.shape_cast %24 : vector<1x16x8xf32> to vector<16x8xf32>
    %cst_27 = arith.constant dense<0.000000e+00> : vector<16x8xf32>
    %26 = tpu.matmul %17, %25, %cst_27 {dimension_numbers = #tpu.dot_dimension_numbers<[1], [0], [0], [1], [0, 0, 1, 1], [], []>} : vector<16x16xf32>, vector<16x8xf32>, vector<16x8xf32> -> vector<16x8xf32>
    %27 = tpu.concatenate %20, %23, %26 in 0 : vector<16x8xf32>, vector<16x8xf32>, vector<16x8xf32> -> vector<48x8xf32>
    %cst_28 = arith.constant dense<0.000000e+00> : vector<16x8xf32>
    %28 = tpu.matmul %0, %27, %cst_28 {dimension_numbers = #tpu.dot_dimension_numbers<[1], [0], [0], [1], [0, 0, 1, 1], [], []>} : vector<16x48xf32>, vector<48x8xf32>, vector<16x8xf32> -> vector<16x8xf32>
    %c0_29 = arith.constant 0 : index
    %c0_30 = arith.constant 0 : index
    %29 = vector.load %arg5[%c0_29, %c0_30] : memref<1x8xf32, #tpu.memory_space<vmem>>, vector<1x8xf32>
    %30 = vector.broadcast %29 : vector<1x8xf32> to vector<16x8xf32>
    %31 = arith.addf %28, %30 : vector<16x8xf32>
    %c0_31 = arith.constant 0 : index
    %c0_32 = arith.constant 0 : index
    %32 = vector.load %arg8[%c0_31, %c0_32] : memref<8x256xf32, #tpu.memory_space<vmem>>, vector<8x256xf32>
    %cst_33 = arith.constant dense<0.000000e+00> : vector<16x256xf32>
    %33 = tpu.matmul %31, %32, %cst_33 {dimension_numbers = #tpu.dot_dimension_numbers<[1], [0], [0], [1], [0, 0, 1, 1], [], []>} : vector<16x8xf32>, vector<8x256xf32>, vector<16x256xf32> -> vector<16x256xf32>
    %34 = vector.extract_strided_slice %33 {offsets = [0, 0], sizes = [16, 128], strides = [1, 1]} : vector<16x256xf32> to vector<16x128xf32>
    %35 = vector.extract_strided_slice %33 {offsets = [0, 128], sizes = [16, 128], strides = [1, 1]} : vector<16x256xf32> to vector<16x128xf32>
    %36 = tpu.concatenate %34, %35 in 0 : vector<16x128xf32>, vector<16x128xf32> -> vector<32x128xf32>
    %37 = tpu.iota {dimensions = array<i32: 1>} : vector<24x32xi32>
    %c0_34 = arith.constant 0 : index
    %c0_35 = arith.constant 0 : index
    %38 = vector.load %arg6[%c0_34, %c0_35] : memref<24x1xi32, #tpu.memory_space<vmem>>, vector<24x1xi32>
    %39 = vector.broadcast %38 : vector<24x1xi32> to vector<24x32xi32>
    %40 = arith.cmpi eq, %37, %39 : vector<24x32xi32>
    %c0_36 = arith.constant 0 : index
    %c0_37 = arith.constant 0 : index
    %41 = vector.load %arg7[%c0_36, %c0_37] : memref<24x1xi32, #tpu.memory_space<vmem>>, vector<24x1xi32>
    %c16_i32 = arith.constant 16 : i32
    %42 = vector.broadcast %c16_i32 : i32 to vector<24x1xi32>
    %43 = arith.addi %41, %42 : vector<24x1xi32>
    %44 = vector.broadcast %43 : vector<24x1xi32> to vector<24x32xi32>
    %45 = arith.cmpi eq, %37, %44 : vector<24x32xi32>
    %46 = arith.ori %40, %45 : vector<24x32xi1>
    %47 = arith.extui %46 : vector<24x32xi1> to vector<24x32xi32>
    %48 = arith.sitofp %47 : vector<24x32xi32> to vector<24x32xf32>
    %cst_38 = arith.constant dense<0.000000e+00> : vector<24x128xf32>
    %49 = tpu.matmul %48, %36, %cst_38 {dimension_numbers = #tpu.dot_dimension_numbers<[1], [0], [0], [1], [0, 0, 1, 1], [], []>} : vector<24x32xf32>, vector<32x128xf32>, vector<24x128xf32> -> vector<24x128xf32>
    %c0_39 = arith.constant 0 : index
    %c0_40 = arith.constant 0 : index
    %50 = vector.load %arg9[%c0_39, %c0_40] : memref<1x128xf32, #tpu.memory_space<vmem>>, vector<1x128xf32>
    %51 = vector.broadcast %50 : vector<1x128xf32> to vector<24x128xf32>
    %52 = arith.addf %49, %51 : vector<24x128xf32>
    %c0_41 = arith.constant 0 : index
    %c0_42 = arith.constant 0 : index
    %53 = vector.load %arg10[%c0_41, %c0_42] : memref<24x128xf32, #tpu.memory_space<vmem>>, vector<24x128xf32>
    tpu.vector_store %arg10[%c0_41, %c0_42], %52 {strides = array<i32>} : memref<24x128xf32, #tpu.memory_space<vmem>>, vector<24x128xf32>,
    return
  }
}

</mosaic_0001>

<bundles_post_ra>
// kernel: model_forward.1
= control target key start
LH: loop header
LB: loop body
LE: loop exit
PB: predicated region body
PF: predicated region fallthrough
CT: control target
= control target key end

     0   :  { %vm40_vm0 = vcmask 64512   ;;  %vm283_vm1 = vcmask 392192   ;;  %vm369_vm2 = vcmask 130048   ;;  %v1130_v43 = vmov 0.0   ;;  %s1293_s2 = inlined_call_operand.vmem [shape: f32[3,8,16], index: 2, kind: input, shape index: {}]   ;;  %s1294_s1 = inlined_call_operand.vmem [shape: f32[16,8], index: 1, kind: input, shape index: {}]   ;;  %s1295_s0 = inlined_call_operand.vmem [shape: f32[16,48], index: 0, kind: input, shape index: {}]   ;;  %s1296_s4 = inlined_call_operand.vmem [shape: f32[3,16,8], index: 4, kind: input, shape index: {}]   ;;  %s1297_s3 = inlined_call_operand.vmem [shape: f32[1,16], index: 3, kind: input, shape index: {}]   ;;  %s1298_s8 = inlined_call_operand.vmem [shape: f32[8,256], index: 8, kind: input, shape index: {}]   ;;  %s1299_s6 = inlined_call_operand.vmem [shape: s32[24,1], index: 6, kind: input, shape index: {}]   ;;  %s1300_s7 = inlined_call_operand.vmem [shape: s32[24,1], index: 7, kind: input, shape index: {}]   ;;  %s1301_s5 = inlined_call_operand.vmem [shape: f32[1,8], index: 5, kind: input, shape index: {}]   ;;  %s1302_s9 = inlined_call_operand.vmem [shape: f32[1,128], index: 9, kind: input, shape index: {}]   ;;  %s1303_s10 = inlined_call_operand.vmem [shape: f32[24,128], index: 10, kind: output, shape index: {}]  }
   0x1   :  { %v39_v0 = vld [vmem:[%s1293_s2] sm:$0xff]  ;;  %v38_v2 = vld [vmem:[%s1294_s1 + $0x8] sm:$0xff]  ;;  %v927_v4 = vld [vmem:[%s1293_s2 + $0x10] sm:$0xff]  ;;  %v1131_v44 = vmov 0   ;;  %v1132_v59 = vmov 0.0|0.0   ;;  %vm1133_vm3 = vmmov 0   ;;  %v774_v60 = vlaneseq }
   0x2   :  { %v37_v1 = vld [vmem:[%s1294_s1] sm:$0xff]  ;;  %999 = vmatprep.subr.mxu1 %v39_v0  ;;  %v924_v3 = vld [vmem:[%s1293_s2 + $0x8] sm:$0xff]  ;;  %1009 = vmatprep.subr.mxu0 %v927_v4  ;;  %v935_v19 = vld [vmem:[%s1296_s4 + $0x10] sm:$0xff]  ;;  %vm825_vm9 = vcmask 261120  }
   0x3   :  { %1001 = vmatprep.mubr.msk.f32.mxu1 %vm40_vm0, %v37_v1  ;;  %1000 = vmatpush3.msra.mxu1 %v39_v0  ;;  %v35_v5 = vld [vmem:[%s1295_s0] sm:$0xff]  ;;  %v36_v15 = vld [vmem:[%s1295_s0 + $0x8] sm:$0xff]  ;;  %v936_v20 = vld [vmem:[%s1296_s4 + $0x18] sm:$0xff] }
   0x4   :  { %1002 = vmatmul.mubr.msk.f32.vlgmr.msra.gmra.mrb[0].mxu1 %vm40_vm0, %v38_v2  ;;  %1004 = vmatprep.subr.mxu1 %v924_v3  ;;  %v367_v16 = vld [vmem:[%s1296_s4] sm:$0xff]  ;;  %v368_v17 = vld [vmem:[%s1296_s4 + $0x8] sm:$0xff]  ;;  %v1098_v21 = vpack.c.bf16 %v936_v20, %v935_v19  ;;  %v793_v51 = vld [vmem:[%s1300_s7 + $0x10] sm:$0xff] }
   0x5   :  { %1005 = vmatpush3.msra.mxu1 %v924_v3  ;;  %1006 = vmatprep.mubr.msk.f32.mxu1 %vm40_vm0, %v37_v1  ;;  %v1094_v18 = vpack.c.bf16 %v368_v17, %v367_v16  ;;  %v930_v22 = vld [vmem:[%s1297_s3] ss:$0 sm:$0xff]  ;;  %v940_v28 = vld [vmem:[%s1296_s4 + $0x28] sm:$0xff]  ;;  %v796_v52 = vadd.s32 16, %v793_v51  ;;  %v778_v53 = vld [vmem:[%s1299_s6 + $0x10] sm:$0xff] }
   0x6   :  { %1010 = vmatpush3.msra.mxu0 %v927_v4  ;;  %1011 = vmatprep.mubr.msk.f32.mxu0 %vm40_vm0, %v37_v1  ;;  %v939_v27 = vld [vmem:[%s1296_s4 + $0x20] sm:$0xff]  ;;  %v690_v41 = vld [vmem:[%s1298_s8 + $0x8] sm:$0xff]  ;;  %v775_v1 = vand.u32 127, %v774_v60 }
   0x7   :  { %1012 = vmatmul.mubr.msk.f32.vlgmr.msra.gmra.mrb[0].mxu0 %vm40_vm0, %v38_v2  ;;  %1095 = vmatprep.subr.bf16.mxu0 %v1094_v18  ;;  %v1102_v31 = vpack.c.bf16 %v940_v28, %v939_v27  ;;  %v689_v42 = vld [vmem:[%s1298_s8] sm:$0xff]  ;;  %v777_v45 = vld [vmem:[%s1299_s6 + $0x8] sm:$0xff] }
   0x8   :  { %1007 = vmatmul.mubr.msk.f32.vlgmr.msra.gmra.mrb[2].mxu1 %vm40_vm0, %v38_v2  ;;  %1097 = vmatpush3.bf16.msra.mxu0 %v1094_v18  ;;  %v776_v46 = vld [vmem:[%s1299_s6] sm:$0xff]  ;;  %v792_v47 = vld [vmem:[%s1300_s7 + $0x8] sm:$0xff] }
   0x9   :  { %1026 = vmatprep.mubr.msk.f32.mxu1 %vm283_vm1, %v35_v5  ;;  %1099 = vmatprep.subr.bf16.mxu0 %v1098_v21  ;;  %v795_v48 = vadd.s32 16, %v792_v47  ;;  %v791_v49 = vld [vmem:[%s1300_s7] sm:$0xff] }
   0xa   :  { %1129 = vset.pattern.permute.xlu1 %v1131_v44  ;;  %1128 = vset.pattern.permute.xlu0 %v1131_v44  ;;  %v794_v50 = vadd.s32 16, %v791_v49  ;;  %v943_v54 = vld [vmem:[%s1301_s5] ss:$0 sm:$0xff] }
   0xb   :  { %783 = vperm.xlu1 %1129, %v777_v45   ;;  %780 = vperm.xlu0 %1128, %v776_v46  }
   0xf   :  { %801 = vperm.xlu1 %1129, %v795_v48   ;;  %798 = vperm.xlu0 %1128, %v794_v50  }
  0x13   :  { %804 = vperm.xlu1 %1129, %v796_v52   ;;  %786 = vperm.xlu0 %1128, %v778_v53  }
  0x8a   :  { %v784_v61 = vpop.permute.xlu1 %783  ;;  %v781_v62 = vpop.permute.xlu0 %780 }
  0x8b   :  { %vm788_vm4 = vcmp.eq.s32.totalorder %v775_v1, %v781_v62  ;;  %vm789_vm7 = vcmp.eq.s32.totalorder %v775_v1, %v784_v61 }
  0xd7   :  { %v1003_v6 = vpop.f32.mrb[0].mxu1 }
  0xd8   :  { %v113_v7 = vpop.f32.mrb[1].mxu1 }
  0xd9   :  { %v1082_v8 = vpack.c.bf16 %v1003_v6, %v113_v7  ;;  %v799_v6 = vpop.permute.xlu0 %798 }
  0xda   :  { %v1013_v9 = vpop.f32.mrb[0].mxu0  ;;  %vm806_vm5 = vcmp.eq.s32.totalorder %v775_v1, %v799_v6 }
  0xdb   :  { %v1008_v10 = vpop.f32.mrb[2].mxu1  ;;  %1083 = vmatprep.subr.bf16.mxu1 %v1082_v8  ;;  %v267_v11 = vpop.f32.mrb[1].mxu0  ;;  %vm809_vm6 = vmor %vm788_vm4, %vm806_vm5 }
  0xdc   :  { %v190_v12 = vpop.f32.mrb[3].mxu1  ;;  %1085 = vmatpush3.bf16.msra.mxu1 %v1082_v8  ;;  %v1090_v13 = vpack.c.bf16 %v1013_v9, %v267_v11 }
  0xdd   :  { %v1086_v14 = vpack.c.bf16 %v1008_v10, %v190_v12  ;;  %v787_v9 = vpop.permute.xlu0 %786  ;;  %v948_v10 = vsel %vm809_vm6, 1.0, %v1130_v43 }
  0xde   :  { %vm790_vm12 = vcmp.eq.s32.totalorder %v775_v1, %v787_v9 }
  0xdf   :  { %1087 = vmatprep.subr.bf16.mxu1 %v1086_v14 }
  0xe0   :  { %1089 = vmatpush3.bf16.msra.mxu1 %v1086_v14 }
  0xe1   :  { %1091 = vmatprep.subr.bf16.mxu1 %v1090_v13 }
  0xe4   :  { %1093 = vmatpush3.bf16.msra.mxu1 %v1090_v13  ;;  %v951_v13 = vld [vmem:[%s1302_s9] ss:$0 sm:$0xff] }
  0xe7   :  { %1027 = vmatmul.mubr.msk.f32.vlgmr.msra.gmra.mrb[4].mxu1 %vm283_vm1, %v36_v15 }
  0xe8   :  { %1062 = vmatprep.mubr.msk.f32.mxu1 %vm283_vm1, %v35_v5  ;;  %v802_v5 = vpop.permute.xlu1 %801 }
  0xe9   :  { %vm807_vm8 = vcmp.eq.s32.totalorder %v775_v1, %v802_v5 }
  0xea   :  { %vm810_vm10 = vmor %vm789_vm7, %vm807_vm8 }
  0xeb   :  { %v949_v11 = vsel %vm810_vm10, 1.0, %v1130_v43 }
  0xec   :  { %v805_v8 = vpop.permute.xlu1 %804 }
  0xed   :  { %vm808_vm11 = vcmp.eq.s32.totalorder %v775_v1, %v805_v8 }
  0xee   :  { %vm811_vm13 = vmor %vm790_vm12, %vm808_vm11 }
  0xef   :  { %v950_v12 = vsel %vm811_vm13, 1.0, %v1130_v43 }
 0x1ba   :  { %v1028_v23 = vpop.f32.mrb[4].mxu1 }
 0x1bb   :  { %v362_v24 = vadd.f32 %v1028_v23, %v930_v22  ;;  %v356_v25 = vpop.f32.mrb[5].mxu1 }
 0x1bc   :  { %v357_v26 = vadd.f32 %v930_v22, %v356_v25 }
 0x1bd   :  { %v366_v30 = vmax.f32 %v362_v24, 0.0 }
 0x1be   :  { %v365_v29 = vmax.f32 %v357_v26, 0.0 }
 0x1c0   :  { %1033 = vmatprep.mubr.msk.f32.mxu0 %vm369_vm2, %v365_v29 }
 0x1c1   :  { %1034 = vmatmul.mubr.msk.f32.vlgmr.msra.gmra.mrb[2].mxu0 %vm369_vm2, %v366_v30 }
 0x1c2   :  { %1101 = vmatpush3.bf16.msra.mxu0 %v1098_v21  ;;  %1040 = vmatprep.mubr.msk.f32.mxu0 %vm369_vm2, %v365_v29 }
 0x1c3   :  { %1103 = vmatprep.subr.bf16.mxu0 %v1102_v31 }
 0x1c5   :  { %1041 = vmatmul.mubr.msk.f32.vlgmr.msra.gmra.mrb[4].mxu0 %vm369_vm2, %v366_v30 }
 0x1c6   :  { %1105 = vmatpush3.bf16.msra.mxu0 %v1102_v31  ;;  %1047 = vmatprep.mubr.msk.f32.mxu0 %vm369_vm2, %v365_v29 }
 0x1c7   :  { %697 = vmatprep.subr.mxu0 %v690_v41 }
 0x1c9   :  { %1048 = vmatmul.mubr.msk.f32.vlgmr.msra.gmra.mrb[6].mxu0 %vm369_vm2, %v366_v30 }
 0x1ca   :  { %698 = vmatpush1.msra.mxu0 %v689_v42  ;;  %761 = vmatprep.mubr.f32.mxu0 %v1130_v43 }
 0x1cb   :  { %1118 = vmatprep.subr.bf16.mxu0 %v1132_v59 }
 0x294   :  { %v1035_v32 = vpop.f32.mrb[2].mxu0 }
 0x295   :  { %v442_v33 = vpop.f32.mrb[3].mxu0 }
 0x296   :  { %v1106_v34 = vpack.c.bf16 %v1035_v32, %v442_v33 }
 0x298   :  { %v1042_v35 = vpop.f32.mrb[4].mxu0  ;;  %1107 = vmatprep.subr.bf16.mxu1 %v1106_v34 }
 0x299   :  { %v520_v36 = vpop.f32.mrb[5].mxu0  ;;  %1109 = vmatpush3.bf16.msra.mxu1 %v1106_v34 }
 0x29a   :  { %v1110_v37 = vpack.c.bf16 %v1042_v35, %v520_v36 }
 0x29c   :  { %v1049_v38 = vpop.f32.mrb[6].mxu0  ;;  %1111 = vmatprep.subr.bf16.mxu1 %v1110_v37 }
 0x29d   :  { %v598_v39 = vpop.f32.mrb[7].mxu0  ;;  %1113 = vmatpush3.bf16.msra.mxu1 %v1110_v37 }
 0x29e   :  { %v1114_v40 = vpack.c.bf16 %v1049_v38, %v598_v39 }
 0x2a0   :  { %1115 = vmatprep.subr.bf16.mxu1 %v1114_v40 }
 0x2a1   :  { %1117 = vmatpush3.bf16.msra.mxu1 %v1114_v40 }
 0x2a4   :  { %1063 = vmatmul.mubr.msk.f32.vlgmr.msra.gmra.mrb[6].mxu1 %vm283_vm1, %v36_v15 }
 0x377   :  { %v1064_v55 = vpop.f32.mrb[6].mxu1 }
 0x378   :  { %v680_v56 = vpop.f32.mrb[7].mxu1  ;;  %v686_v58 = vadd.f32 %v1064_v55, %v943_v54 }
 0x379   :  { %v681_v57 = vadd.f32 %v943_v54, %v680_v56 }
 0x37b   :  { %946 = vmatmul.mubr.msk.f32.vlgmr.msra.gmra.mrb[8].mxu0 %vm40_vm0, %v681_v57 }
 0x37c   :  { %767 = vmatprep.mubr.f32.mxu0 %v1130_v43 }
 0x37f   :  { %947 = vmatmul.mubr.msk.f32.gmra.mrb[10].mxu0 %vm40_vm0, %v686_v58 }
 0x380   :  { %1073 = vmatprep.mubr.msk.f32.mxu0 %vm1133_vm3, %v1130_v43 }
 0x44e   :  { %v763_v63 = vpop.f32.mrb[8].mxu0 }
 0x44f   :  { %v765_v0 = vpop.f32.mrb[9].mxu0 }
 0x452   :  { %v769_v2 = vpop.f32.mrb[10].mxu0 }
 0x453   :  { %v1119_v3 = vpack.c.bf16 %v769_v2, %v763_v63  ;;  %v771_v4 = vpop.f32.mrb[11].mxu0 }
 0x454   :  { %v1122_v7 = vpack.c.bf16 %v771_v4, %v765_v0 }
 0x455   :  { %1120 = vmatpush3.bf16.msra.mxu0 %v1119_v3 }
 0x456   :  { %1121 = vmatprep.subr.bf16.mxu0 %v1132_v59 }
 0x459   :  { %1123 = vmatpush3.bf16.msra.mxu0 %v1122_v7 }
 0x45c   :  { %1074 = vmatmul.mubr.msk.f32.vlgmr.msra.gmra.mrb[12].mxu0 %vm825_vm9, %v948_v10 }
 0x45d   :  { %1076 = vmatprep.mubr.msk.f32.mxu0 %vm1133_vm3, %v1130_v43 }
 0x460   :  { %1077 = vmatmul.mubr.msk.f32.gmra.mrb[14].mxu0 %vm825_vm9, %v949_v11 }
 0x461   :  { %1079 = vmatprep.mubr.msk.f32.mxu0 %vm1133_vm3, %v1130_v43 }
 0x464   :  { %1080 = vmatmul.mubr.msk.f32.gmra.mrb[16].mxu0 %vm825_vm9, %v950_v12 }
 0x52f   :  { %v901_v14 = vpop.f32.mrb[12].mxu0 }
 0x530   :  { %v902_v15 = vadd.f32 %v951_v13, %v901_v14  ;;  %v1075_v16 = vpop.f32.mrb[13].mxu0 }
 0x532   :  { %915 = vst [vmem:[%s1303_s10] sm:$0xff] %v902_v15 }
 0x533   :  { %v906_v17 = vpop.f32.mrb[14].mxu0 }
 0x534   :  { %v907_v18 = vadd.f32 %v951_v13, %v906_v17  ;;  %v1078_v19 = vpop.f32.mrb[15].mxu0 }
 0x536   :  { %916 = vst [vmem:[%s1303_s10 + $0x8] sm:$0xff] %v907_v18 }
 0x537   :  { %v911_v20 = vpop.f32.mrb[16].mxu0 }
 0x538   :  { %v912_v21 = vadd.f32 %v951_v13, %v911_v20  ;;  %v1081_v22 = vpop.f32.mrb[17].mxu0 }
 0x53a   :  { %917 = vst [vmem:[%s1303_s10 + $0x10] sm:$0xff] %v912_v21 }

</bundles_post_ra>
